<compile_context>
chip_gen: v5e
topology: v5e:2x2
jax: 0.10.0
libtpu: 0.0.40
codegen_flags: <defaults>
</compile_context>

<pallas_src>
import functools

import jax
import jax.numpy as jnp
from jax.experimental import pallas as pl
from jax.experimental.pallas import tpu as pltpu

BN_EPS = 1e-5
_LANE = 128


def _se_kernel(x_ref, w1t_ref, b1_ref, w2t_ref, b2_ref, o_ref, *, inv_hw):
    # x_ref: (Nb, C, HW_pad); padded lanes are zero, so sum * (1/HW_true) == mean.
    x = x_ref[...]
    x32 = x.astype(jnp.float32)

    # AdaptiveAvgPool2d(1): lane-axis reduce, normalize by the true H*W.
    pooled = jnp.sum(x32, axis=-1) * inv_hw                    # (Nb, C)

    # Conv2d(C -> C/r, 1x1, bias=False) + BatchNorm (folded) + ReLU
    z = jnp.dot(pooled, w1t_ref[...],
                preferred_element_type=jnp.float32)            # (Nb, Cr)
    z = jnp.maximum(z + b1_ref[...], 0.0)

    # Conv2d(C/r -> C, 1x1, bias=False) + BatchNorm (folded) + hsigmoid
    s = jnp.dot(z, w2t_ref[...],
                preferred_element_type=jnp.float32)            # (Nb, C)
    s = s + b2_ref[...]
    gate = jnp.clip(s + 3.0, 0.0, 6.0) * (1.0 / 6.0)           # hsigmoid

    # x * se(x): broadcast the per-(batch, channel) gate over spatial lanes.
    o_ref[...] = (x32 * gate[:, :, None]).astype(o_ref.dtype)


def se_module(x, params, *, block_bytes_target=4 * 1024 * 1024):
    """x: (N, C, H, W). params: SE conv weights + BN stats (see init_params)."""
    N, C, H, W = x.shape
    HW = H * W
    HW_pad = max(_LANE, pl.cdiv(HW, _LANE) * _LANE)

    # ---- Fold BatchNorm (inference form) into the 1x1 convs (wrapper-side) ----
    scale1 = params["g1"][:, 0] * jax.lax.rsqrt(params["v1"][:, 0] + BN_EPS)
    scale2 = params["g2"][:, 0] * jax.lax.rsqrt(params["v2"][:, 0] + BN_EPS)
    w1t = (params["w1"] * scale1[:, None]).T.astype(jnp.float32)        # (C, Cr)
    b1 = (params["b1"][:, 0] - params["m1"][:, 0] * scale1)[None, :]    # (1, Cr)
    w2t = (params["w2"] * scale2[:, None]).T.astype(jnp.float32)        # (Cr, C)
    b2 = (params["b2"][:, 0] - params["m2"][:, 0] * scale2)[None, :]    # (1, C)
    Cr = w1t.shape[1]

    # ---- Flatten spatial dims and lane-pad to a multiple of 128 ----
    x_flat = x.reshape(N, C, HW)
    if HW_pad != HW:
        x_flat = jnp.pad(x_flat, ((0, 0), (0, 0), (0, HW_pad - HW)))

    # ---- MiB-scale batch tiles so the per-grid-step cost amortizes ----
    itemsize = jnp.dtype(x.dtype).itemsize
    bytes_per_batch = C * HW_pad * itemsize
    Nb = int(max(1, min(N, block_bytes_target // max(1, bytes_per_batch))))
    N_pad = pl.cdiv(N, Nb) * Nb
    if N_pad != N:
        x_flat = jnp.pad(x_flat, ((0, N_pad - N), (0, 0), (0, 0)))

    # TODO(synk): for very large C*HW (per-batch slab > ~8 MiB) add a spatial
    # grid axis with a two-phase pool-then-scale pass so tiles stay VMEM-bounded
    # on v7x's 64 MiB.

    full2d = lambda shape: pl.BlockSpec(shape, lambda n: (0, 0))
    cost = pl.CostEstimate(
        flops=int(2 * N * C * Cr * 2 + 2 * N * C * HW),
        transcendentals=0,
        bytes_accessed=int(2 * N * C * HW * itemsize
                           + (w1t.size + w2t.size + b1.size + b2.size) * 4),
    )

    out = pl.pallas_call(
        functools.partial(_se_kernel, inv_hw=1.0 / float(HW)),
        out_shape=jax.ShapeDtypeStruct((N_pad, C, HW_pad), x.dtype),
        grid=(N_pad // Nb,),
        in_specs=[
            pl.BlockSpec((Nb, C, HW_pad), lambda n: (n, 0, 0)),  # x
            full2d((C, Cr)),                                      # w1 (BN-folded, T)
            full2d((1, Cr)),                                      # b1
            full2d((Cr, C)),                                      # w2 (BN-folded, T)
            full2d((1, C)),                                       # b2
        ],
        out_specs=pl.BlockSpec((Nb, C, HW_pad), lambda n: (n, 0, 0)),
        compiler_params=pltpu.CompilerParams(
            dimension_semantics=("parallel",),
            vmem_limit_bytes=32 * 1024 * 1024),
        cost_estimate=cost,
    )(x_flat, w1t, b1, w2t, b2)

    return out[:N, :, :HW].reshape(N, C, H, W)


def se_module_ref(x, p):
    """Pure-JAX reference (matches PyTorch SeModule eval semantics)."""
    pooled = jnp.mean(x, axis=(2, 3))                          # (N, C)
    z = pooled @ p["w1"].T
    z = (z - p["m1"][:, 0]) * (p["g1"][:, 0] *
         jax.lax.rsqrt(p["v1"][:, 0] + BN_EPS)) + p["b1"][:, 0]
    z = jnp.maximum(z, 0.0)
    s = z @ p["w2"].T
    s = (s - p["m2"][:, 0]) * (p["g2"][:, 0] *
         jax.lax.rsqrt(p["v2"][:, 0] + BN_EPS)) + p["b2"][:, 0]
    s = jnp.clip(s + 3.0, 0.0, 6.0) / 6.0
    return x * s[:, :, None, None]


def init_params(key, in_size, reduction=4):
    mid = in_size // reduction
    k1, k2, k3, k4 = jax.random.split(key, 4)
    return {
        "w1": jax.random.normal(k1, (mid, in_size), jnp.float32) * 0.1,
        "w2": jax.random.normal(k2, (in_size, mid), jnp.float32) * 0.1,
        "g1": jnp.ones((mid, 1), jnp.float32) * 1.1,
        "b1": jnp.full((mid, 1), 0.05, jnp.float32),
        "m1": jax.random.normal(k3, (mid, 1), jnp.float32) * 0.01,
        "v1": jnp.ones((mid, 1), jnp.float32) * 0.9,
        "g2": jnp.ones((in_size, 1), jnp.float32) * 0.95,
        "b2": jnp.full((in_size, 1), -0.02, jnp.float32),
        "m2": jax.random.normal(k4, (in_size, 1), jnp.float32) * 0.01,
        "v2": jnp.ones((in_size, 1), jnp.float32) * 1.05,
    }


if __name__ == "__main__":
    key = jax.random.PRNGKey(0)
    kx1, kx2, kp1, kp2 = jax.random.split(key, 4)

    # Case 1: lane-dense spatial (HW = 256, multiple of 128).
    N, C, H, W = 2, 8, 16, 16
    x1 = jax.random.normal(kx1, (N, C, H, W), jnp.float32)
    p1 = init_params(kp1, C, reduction=4)
    out1 = jax.block_until_ready(se_module(x1, p1))
    ref1 = se_module_ref(x1, p1)
    assert out1.shape == x1.shape
    assert jnp.allclose(out1, ref1, atol=1e-5, rtol=1e-5), \
        f"case1 max err {jnp.max(jnp.abs(out1 - ref1))}"

    # Case 2: ragged spatial (7x7 = 49 -> lane-padded to 128 inside wrapper).
    N2, C2, H2, W2 = 3, 16, 7, 7
    x2 = jax.random.normal(kx2, (N2, C2, H2, W2), jnp.float32)
    p2 = init_params(kp2, C2, reduction=4)
    out2 = jax.block_until_ready(se_module(x2, p2))
    ref2 = se_module_ref(x2, p2)
    assert out2.shape == x2.shape
    assert jnp.allclose(out2, ref2, atol=1e-5, rtol=1e-5), \
        f"case2 max err {jnp.max(jnp.abs(out2 - ref2))}"

    print("KERNEL_OK")
</pallas_src>

<mosaic_0001>
module attributes {stable_mosaic.version = 11 : i64} {
  func.func @_se_kernel(%arg0: i32, %arg1: memref<2x8x256xf32, #tpu.memory_space<vmem>>, %arg2: memref<8x2xf32, #tpu.memory_space<vmem>>, %arg3: memref<1x2xf32, #tpu.memory_space<vmem>>, %arg4: memref<2x8xf32, #tpu.memory_space<vmem>>, %arg5: memref<1x8xf32, #tpu.memory_space<vmem>>, %arg6: memref<2x8x256xf32, #tpu.memory_space<vmem>>) attributes {dimension_semantics = [#tpu.dimension_semantics<parallel>], iteration_bounds = array<i64: 1>, scalar_prefetch = 0 : i64, scratch_operands = 0 : i64, tpu.core_type = #tpu.core_type<tc>, window_params = [{transform_indices = @transform_0, window_bounds = array<i64: 2, 8, 256>}, {pipeline_mode = #tpu.pipeline_mode<synchronous>, transform_indices = @transform_1, window_bounds = array<i64: 8, 2>}, {pipeline_mode = #tpu.pipeline_mode<synchronous>, transform_indices = @transform_2, window_bounds = array<i64: 1, 2>}, {pipeline_mode = #tpu.pipeline_mode<synchronous>, transform_indices = @transform_3, window_bounds = array<i64: 2, 8>}, {pipeline_mode = #tpu.pipeline_mode<synchronous>, transform_indices = @transform_4, window_bounds = array<i64: 1, 8>}, {transform_indices = @transform_5, window_bounds = array<i64: 2, 8, 256>}]} {
    %c0 = arith.constant 0 : index
    %c0_0 = arith.constant 0 : index
    %c0_1 = arith.constant 0 : index
    %0 = vector.load %arg1[%c0, %c0_0, %c0_1] : memref<2x8x256xf32, #tpu.memory_space<vmem>>, vector<2x8x256xf32>
    %cst = arith.constant dense<0.000000e+00> : vector<2x8xf32>
    %1 = vector.multi_reduction <add>, %0, %cst [2] : vector<2x8x256xf32> to vector<2x8xf32>
    %cst_2 = arith.constant 3.906250e-03 : f32
    %2 = vector.broadcast %cst_2 : f32 to vector<2x8xf32>
    %3 = arith.mulf %1, %2 : vector<2x8xf32>
    %c0_3 = arith.constant 0 : index
    %c0_4 = arith.constant 0 : index
    %4 = vector.load %arg2[%c0_3, %c0_4] : memref<8x2xf32, #tpu.memory_space<vmem>>, vector<8x2xf32>
    %cst_5 = arith.constant dense<0.000000e+00> : vector<2x2xf32>
    %5 = tpu.matmul %3, %4, %cst_5 {dimension_numbers = #tpu.dot_dimension_numbers<[1], [0], [0], [1], [0, 0, 1, 1], [], []>} : vector<2x8xf32>, vector<8x2xf32>, vector<2x2xf32> -> vector<2x2xf32>
    %c0_6 = arith.constant 0 : index
    %c0_7 = arith.constant 0 : index
    %6 = vector.load %arg3[%c0_6, %c0_7] : memref<1x2xf32, #tpu.memory_space<vmem>>, vector<1x2xf32>
    %7 = vector.broadcast %6 : vector<1x2xf32> to vector<2x2xf32>
    %8 = arith.addf %5, %7 : vector<2x2xf32>
    %cst_8 = arith.constant 0.000000e+00 : f32
    %9 = vector.broadcast %cst_8 : f32 to vector<2x2xf32>
    %10 = arith.maximumf %8, %9 : vector<2x2xf32>
    %c0_9 = arith.constant 0 : index
    %c0_10 = arith.constant 0 : index
    %11 = vector.load %arg4[%c0_9, %c0_10] : memref<2x8xf32, #tpu.memory_space<vmem>>, vector<2x8xf32>
    %cst_11 = arith.constant dense<0.000000e+00> : vector<2x8xf32>
    %12 = tpu.matmul %10, %11, %cst_11 {dimension_numbers = #tpu.dot_dimension_numbers<[1], [0], [0], [1], [0, 0, 1, 1], [], []>} : vector<2x2xf32>, vector<2x8xf32>, vector<2x8xf32> -> vector<2x8xf32>
    %c0_12 = arith.constant 0 : index
    %c0_13 = arith.constant 0 : index
    %13 = vector.load %arg5[%c0_12, %c0_13] : memref<1x8xf32, #tpu.memory_space<vmem>>, vector<1x8xf32>
    %14 = vector.broadcast %13 : vector<1x8xf32> to vector<2x8xf32>
    %15 = arith.addf %12, %14 : vector<2x8xf32>
    %cst_14 = arith.constant 3.000000e+00 : f32
    %16 = vector.broadcast %cst_14 : f32 to vector<2x8xf32>
    %17 = arith.addf %15, %16 : vector<2x8xf32>
    %cst_15 = arith.constant 0.000000e+00 : f32
    %cst_16 = arith.constant 6.000000e+00 : f32
    %18 = vector.broadcast %cst_15 : f32 to vector<2x8xf32>
    %19 = arith.maximumf %18, %17 : vector<2x8xf32>
    %20 = vector.broadcast %cst_16 : f32 to vector<2x8xf32>
    %21 = arith.minimumf %20, %19 : vector<2x8xf32>
    %cst_17 = arith.constant 0.166666672 : f32
    %22 = vector.broadcast %cst_17 : f32 to vector<2x8xf32>
    %23 = arith.mulf %21, %22 : vector<2x8xf32>
    %24 = vector.shape_cast %23 : vector<2x8xf32> to vector<2x8x1xf32>
    %25 = vector.broadcast %24 : vector<2x8x1xf32> to vector<2x8x256xf32>
    %26 = arith.mulf %0, %25 : vector<2x8x256xf32>
    %c0_18 = arith.constant 0 : index
    %c0_19 = arith.constant 0 : index
    %c0_20 = arith.constant 0 : index
    %27 = vector.load %arg6[%c0_18, %c0_19, %c0_20] : memref<2x8x256xf32, #tpu.memory_space<vmem>>, vector<2x8x256xf32>
    tpu.vector_store %arg6[%c0_18, %c0_19, %c0_20], %26 {strides = array<i32>} : memref<2x8x256xf32, #tpu.memory_space<vmem>>, vector<2x8x256xf32>,
    return
  }
  func.func @transform_0(%arg0: i32) -> (i32, i32, i32) {
    %c0_i32 = arith.constant 0 : i32
    %c0_i32_0 = arith.constant 0 : i32
    %c0_i32_1 = arith.constant 0 : i32
    return %arg0, %c0_i32, %c0_i32_0 : i32, i32, i32
  }
  func.func @transform_1(%arg0: i32) -> (i32, i32) {
    %c0_i32 = arith.constant 0 : i32
    %c0_i32_0 = arith.constant 0 : i32
    %c0_i32_1 = arith.constant 0 : i32
    return %c0_i32, %c0_i32_0 : i32, i32
  }
  func.func @transform_2(%arg0: i32) -> (i32, i32) {
    %c0_i32 = arith.constant 0 : i32
    %c0_i32_0 = arith.constant 0 : i32
    %c0_i32_1 = arith.constant 0 : i32
    return %c0_i32, %c0_i32_0 : i32, i32
  }
  func.func @transform_3(%arg0: i32) -> (i32, i32) {
    %c0_i32 = arith.constant 0 : i32
    %c0_i32_0 = arith.constant 0 : i32
    %c0_i32_1 = arith.constant 0 : i32
    return %c0_i32, %c0_i32_0 : i32, i32
  }
  func.func @transform_4(%arg0: i32) -> (i32, i32) {
    %c0_i32 = arith.constant 0 : i32
    %c0_i32_0 = arith.constant 0 : i32
    %c0_i32_1 = arith.constant 0 : i32
    return %c0_i32, %c0_i32_0 : i32, i32
  }
  func.func @transform_5(%arg0: i32) -> (i32, i32, i32) {
    %c0_i32 = arith.constant 0 : i32
    %c0_i32_0 = arith.constant 0 : i32
    %c0_i32_1 = arith.constant 0 : i32
    return %arg0, %c0_i32, %c0_i32_0 : i32, i32, i32
  }
}

</mosaic_0001>

<bundles_post_ra>
// kernel: tpu_custom_call.1
= control target key start
LH: loop header
LB: loop body
LE: loop exit
PB: predicated region body
PF: predicated region fallthrough
CT: control target
= control target key end

     0   :  { %10 = vsyncpa [#allocation3], 0  ;;  %s285_s0 = inlined_call_operand.hbm [shape: f32[2,8,256], index: 0, kind: input, shape index: {}]   ;;  %s286_s1 = inlined_call_operand.vmem [shape: f32[8,2], index: 1, kind: input, shape index: {}]   ;;  %s287_s2 = inlined_call_operand.vmem [shape: f32[1,2], index: 2, kind: input, shape index: {}]   ;;  %s288_s3 = inlined_call_operand.vmem [shape: f32[2,8], index: 3, kind: input, shape index: {}]   ;;  %s289_s4 = inlined_call_operand.vmem [shape: f32[1,8], index: 4, kind: input, shape index: {}]   ;;  %s290_s5 = inlined_call_operand.hbm [shape: f32[2,8,256], index: 5, kind: output, shape index: {}]  }
   0x1   :  { %11 = vsyncpa [#allocation4], 0  ;;  %s16_s20 = sshll.u32 %s285_s0, 4  ;;  %s227_s21 = smov [#allocation2]   ;;  %s17_s20 = int_to_ptr.hbm [resolvable:$true] %s16_s20 }
   0x2   :  { %s18_s22 = sshll.u32 %s227_s21, 4  ;;  %s228_s23 = smov 256   ;;  %s19_s22 = int_to_ptr.vmem [resolvable:$true] %s18_s22 }
   0x3   :  { %s229_s24 = smov 16  }
   0x4   :  { %24 = dma.hbm_to_vmem [thread:$0]  %s17_s20, 512, %s19_s22, [#allocation3], %s228_s23, %s228_s23, %s229_s24  }
   0x5   :  { %223 = dma.done.wait [#allocation3], 512  }
   0x6   :  { %224 = vsyncadd [#allocation3], 4294966784  ;;  %v37_v0 = vld [vmem:[#allocation2] sm:$0xff]  ;;  %v38_v1 = vld [vmem:[#allocation2 + $0x8] sm:$0xff]  ;;  %v56_v8 = vlaneseq  ;;  %vm60_vm0 = vcmask 1041409   ;;  %vm62_vm1 = vcmask 64512  }
   0x7   :  { %v41_v2 = vadd.f32 %v38_v1, %v37_v0  ;;  %v39_v3 = vld [vmem:[#allocation2 + $0x10] sm:$0xff]  ;;  %v40_v4 = vld [vmem:[#allocation2 + $0x18] sm:$0xff]  ;;  %v49_v6 = vld [vmem:[%s286_s1] sm:$0xff]  ;;  %vm95_vm2 = vcmask 1041408   ;;  %vm91_vm3 = vcmask 15360  }
   0x8   :  { %v44_v5 = vadd.f32 %v40_v4, %v39_v3  ;;  %80 = vmatpush.msra.mxu0 %v49_v6  ;;  %v57_v9 = vand.u32 127, %v56_v8  ;;  %v86_v16 = vld [vmem:[%s288_s3] sm:$0x3]  ;;  %v125_v21 = vshrl.u32 %v56_v8, 7 }
   0x9   :  { %42 = vadd.xlane.f32.xlu0 %v41_v2  ;;  %165 = vmatpush.msk.msra.mxu1 %vm95_vm2, %v86_v16  ;;  %v173_v17 = vld [vmem:[%s287_s2] ss:$0 sm:$0xff]  ;;  %s230_s2 = smov [#allocation5]  }
   0xa   :  { %171 = vset.pattern.permute.xlu1 %v125_v21  ;;  %172 = vset.pattern.permute.xlu0 %v125_v21  ;;  %v174_v22 = vld [vmem:[%s289_s4] ss:$0 sm:$0xff]  ;;  %s149_s3 = sshll.u32 %s230_s2, 4  ;;  %s151_s4 = sshll.u32 %s290_s5, 4  ;;  %s150_s3 = int_to_ptr.vmem [resolvable:$true] %s149_s3  ;;  %s152_s4 = int_to_ptr.hbm [resolvable:$true] %s151_s4 }
  0x11   :  { %45 = vadd.xlane.f32.xlu0 %v44_v5 }
  0x7c   :  { %v43_v7 = vpop.xlane.xlu0 %42 }
  0x7d   :  { %v47_v10 = vmul.f32 0.00390625, %v43_v7 }
  0x7f   :  { %v58_v13 = vperm.slane %v47_v10, %v57_v9 }
  0x84   :  { %v46_v11 = vpop.xlane.xlu0 %45 }
  0x85   :  { %v48_v12 = vmul.f32 0.00390625, %v46_v11 }
  0x87   :  { %v59_v14 = vperm.slane %v48_v12, %v57_v9 }
  0x89   :  { %v61_v15 = vsel %vm60_vm0, %v59_v14, %v58_v13 }
  0x8a   :  { %164 = vmatmul.msk.f32.vlgmr.msra.gmra.mxu0 %vm62_vm1, %v61_v15 }
 0x107   :  { %v82_v18 = vpop.f32.mrf.mxu0 }
 0x108   :  { %v83_v19 = vadd.f32 %v173_v17, %v82_v18 }
 0x10a   :  { %v85_v20 = vmax.f32 %v83_v19, 0.0 }
 0x10c   :  { %166 = vmatmul.msk.f32.vlgmr.msra.gmra.mxu1 %vm91_vm3, %v85_v20 }
 0x189   :  { %v116_v23 = vpop.f32.mrf.mxu1 }
 0x18a   :  { %v117_v24 = vadd.f32 %v174_v22, %v116_v23 }
 0x18c   :  { %v119_v25 = vadd.f32 3.0, %v117_v24 }
 0x18e   :  { %v120_v26 = vmax.f32 %v119_v25, 0.0 }
 0x190   :  { %v121_v27 = vmin.f32 %v120_v26, 6.0 }
 0x192   :  { %v122_v28 = vmul.f32 0.16666667, %v121_v27 }
 0x194   :  { %v123_v29 = vperm.slane %v122_v28, 0  ;;  %v130_v30 = vperm.slane %v122_v28, 1 }
 0x196   :  { %128 = vperm.xlu1 %171, %v123_v29  }
 0x19e   :  { %135 = vperm.xlu1 %171, %v130_v30  }
 0x208   :  { %v129_v31 = vpop.permute.xlu1 %128 }
 0x209   :  { %v137_v32 = vmul.f32 %v129_v31, %v37_v0  ;;  %v138_v33 = vmul.f32 %v129_v31, %v38_v1 }
 0x20b   :  { %141 = vst [vmem:[#allocation5] sm:$0xff] %v137_v32 }
 0x20c   :  { %142 = vst [vmem:[#allocation5 + $0x8] sm:$0xff] %v138_v33 }
 0x210   :  { %v136_v34 = vpop.permute.xlu1 %135 }
 0x211   :  { %v139_v35 = vmul.f32 %v136_v34, %v39_v3  ;;  %v140_v36 = vmul.f32 %v136_v34, %v40_v4 }
 0x213   :  { %143 = vst [vmem:[#allocation5 + $0x10] sm:$0xff] %v139_v35 }
 0x214   :  { %144 = vst [vmem:[#allocation5 + $0x18] sm:$0xff] %v140_v36 }
 0x215   :  { %157 = dma.vmem_to_hbm [thread:$0]  %s150_s3, 512, %s152_s4, [#allocation4], %s228_s23, %s228_s23, %s229_s24  }
 0x216   :  { %225 = dma.done.wait [#allocation4], 512  }
 0x217   :  { %226 = vsyncadd [#allocation4], 4294966784 }
 0x218   :  { %162 = vsyncpa [#allocation3], 1 }
 0x219   :  { %163 = vsyncpa [#allocation4], 1 }

</bundles_post_ra>
